<compile_context>
chip_gen: v7x
topology: tpu7x:2x2x1
jax: 0.10.0
libtpu: 0.0.40
codegen_flags: <defaults>
</compile_context>

<pallas_src>
import math

import jax
import jax.numpy as jnp
from jax import lax
from jax.experimental import pallas as pl
from jax.experimental.pallas import tpu as pltpu


# ----------------------------------------------------------------------------
# Pallas kernel factory: LSTM recurrence + LayerNorm + FC head, one invocation.
# ----------------------------------------------------------------------------
def make_lstm_head_kernel(T, Bp, E, H, O, out_pad):
    def kernel(x_ref, wih_ref, whh_ref, b_ref, gamma_ref, beta_ref,
               wfc_ref, bfc_ref, out_ref):
        # x_ref:   (Bp, T*E)    lane-dense input, batch padded to sublane mult.
        # wih_ref: (E, 4H)      W_ih^T, g-gate columns pre-scaled by 2
        # whh_ref: (H, 4H)      W_hh^T, g-gate columns pre-scaled by 2
        # b_ref:   (1, 4H)      b_ih + b_hh, g-gate columns pre-scaled by 2
        # gamma/beta: (1, H)    LayerNorm affine
        # wfc_ref: (1, H) if O == 1 else (H, out_pad)   [zero lane-padded]
        # bfc_ref: (1, 1) if O == 1 else (1, out_pad)
        # out_ref: (Bp, out_pad)
        x_all = x_ref[...]                                     # (Bp, T*E)
        wih = wih_ref[...]                                     # (E, 4H)
        whh = whh_ref[...]                                     # (H, 4H)
        b = b_ref[...]                                         # (1, 4H)

        h = jnp.zeros((Bp, H), jnp.float32)
        c = jnp.zeros((Bp, H), jnp.float32)

        # ---- Recurrence, fully unrolled (T static & small) ------------------
        for t in range(T):
            x_t = x_all[:, t * E:(t + 1) * E]                  # (Bp, E) static slice
            if E == 1:
                # (Bp, 1) * (1, 4H): VPU broadcast-multiply, no MXU, and it is
                # independent of h so it overlaps the previous step's EUP work.
                x_proj = x_t * wih + b
            else:
                x_proj = jnp.dot(x_t, wih,
                                 preferred_element_type=jnp.float32) + b

            gates = x_proj + jnp.dot(h, whh,
                                     preferred_element_type=jnp.float32)  # (Bp, 4H)
            # Single EUP pass over the whole gates vreg.  Because the g-gate
            # pre-activations were scaled by 2 in the wrapper,
            # 2*sigmoid(2g) - 1 == tanh(g) exactly.
            sig = jax.nn.sigmoid(gates)
            # PyTorch gate order: input, forget, cell(g), output.
            i_g = sig[:, 0 * H:1 * H]
            f_g = sig[:, 1 * H:2 * H]
            g_g = 2.0 * sig[:, 2 * H:3 * H] - 1.0
            o_g = sig[:, 3 * H:4 * H]
            c = f_g * c + i_g * g_g
            h = o_g * jnp.tanh(c)

        # ---- Dropout (eval mode) = identity; LayerNorm over H (eps=1e-5) ----
        mu = jnp.mean(h, axis=-1, keepdims=True)
        var = jnp.mean((h - mu) ** 2, axis=-1, keepdims=True)
        hn = (h - mu) * lax.rsqrt(var + 1e-5)
        hn = hn * gamma_ref[...] + beta_ref[...]

        # ---- FC head ---------------------------------------------------------
        if O == 1:
            # VPU multiply + XLU lane-reduce; avoids a 1-lane MXU matmul and a
            # masked 1-lane store (output block is lane-padded to `out_pad`).
            y = jnp.sum(hn * wfc_ref[...], axis=-1, keepdims=True) + bfc_ref[...]
            out_ref[...] = jnp.broadcast_to(y, (Bp, out_pad))
        else:
            out_ref[...] = (jnp.dot(hn, wfc_ref[...],
                                    preferred_element_type=jnp.float32)
                            + bfc_ref[...])

    return kernel


# ----------------------------------------------------------------------------
# One-time parameter preprocessing (transposes, bias fold, gate rescale,
# FC lane-padding).  Done once; the results are captured as jit constants.
# ----------------------------------------------------------------------------
def preprocess_params(params):
    H = params["w_hh"].shape[1]          # w_hh: (4H, H)
    E = params["w_ih"].shape[1]          # w_ih: (4H, E)
    O = params["w_fc"].shape[0]          # w_fc: (O, H)

    wih_t = params["w_ih"].T.astype(jnp.float32)                  # (E, 4H)
    whh_t = params["w_hh"].T.astype(jnp.float32)                  # (H, 4H)
    b = (params["b_ih"] + params["b_hh"]).reshape(1, 4 * H).astype(jnp.float32)

    # Scale the g-gate (cell candidate) columns by 2 so the kernel can compute
    # tanh(g) = 2*sigmoid(2g) - 1 from the single sigmoid pass over all gates.
    scale = jnp.ones((1, 4 * H), jnp.float32).at[:, 2 * H:3 * H].set(2.0)
    wih_t = wih_t * scale
    whh_t = whh_t * scale
    b = b * scale

    gamma = params["gamma"].reshape(1, H).astype(jnp.float32)
    beta = params["beta"].reshape(1, H).astype(jnp.float32)

    if O == 1:
        out_pad = 128
        wfc = params["w_fc"].reshape(1, H).astype(jnp.float32)    # row vector
        bfc = params["b_fc"].reshape(1, 1).astype(jnp.float32)
    else:
        out_pad = ((O + 127) // 128) * 128
        wfc = jnp.zeros((H, out_pad), jnp.float32).at[:, :O].set(
            params["w_fc"].T.astype(jnp.float32))
        bfc = jnp.zeros((1, out_pad), jnp.float32).at[:, :O].set(
            params["b_fc"].reshape(1, O).astype(jnp.float32))

    return dict(wih=wih_t, whh=whh_t, b=b, gamma=gamma, beta=beta,
                wfc=wfc, bfc=bfc, E=E, H=H, O=O, out_pad=out_pad)


# ----------------------------------------------------------------------------
# Forward factory: preprocess once, return a single-jit forward(x).
# ----------------------------------------------------------------------------
def make_lstm_forward(params):
    prep = preprocess_params(params)
    E, H, O, out_pad = prep["E"], prep["H"], prep["O"], prep["out_pad"]
    vmem = pl.BlockSpec(memory_space=pltpu.MemorySpace.VMEM)

    @jax.jit
    def forward(x):
        B, T, Ein = x.shape
        assert Ein == E, (Ein, E)
        Bp = max(8, ((B + 7) // 8) * 8)          # pad batch to a sublane multiple

        # Lane-dense 2-D input block: (Bp, T*E); one vreg / one DMA at toy sizes.
        x2d = x.reshape(B, T * E).astype(jnp.float32)
        if Bp != B:
            x2d = jnp.pad(x2d, ((0, Bp - B), (0, 0)))

        kernel = make_lstm_head_kernel(T, Bp, E, H, O, out_pad)
        out = pl.pallas_call(
            kernel,
            out_shape=jax.ShapeDtypeStruct((Bp, out_pad), jnp.float32),
            in_specs=[vmem] * 8,
            out_specs=vmem,
        )(x2d, prep["wih"], prep["whh"], prep["b"],
          prep["gamma"], prep["beta"], prep["wfc"], prep["bfc"])

        return out[:B, :O]

    return forward


# ----------------------------------------------------------------------------
# Pure-JAX reference (mirrors torch semantics, unscaled weights) for checking.
# ----------------------------------------------------------------------------
def reference_forward(x, params):
    B, T, E = x.shape
    H = params["w_hh"].shape[1]
    h = jnp.zeros((B, H), jnp.float32)
    c = jnp.zeros((B, H), jnp.float32)
    for t in range(T):
        gates = (x[:, t, :] @ params["w_ih"].T + h @ params["w_hh"].T
                 + params["b_ih"] + params["b_hh"])
        i_g = jax.nn.sigmoid(gates[:, 0 * H:1 * H])
        f_g = jax.nn.sigmoid(gates[:, 1 * H:2 * H])
        g_g = jnp.tanh(gates[:, 2 * H:3 * H])
        o_g = jax.nn.sigmoid(gates[:, 3 * H:4 * H])
        c = f_g * c + i_g * g_g
        h = o_g * jnp.tanh(c)
    mu = jnp.mean(h, axis=-1, keepdims=True)
    var = jnp.mean((h - mu) ** 2, axis=-1, keepdims=True)
    hn = (h - mu) / jnp.sqrt(var + 1e-5) * params["gamma"] + params["beta"]
    return hn @ params["w_fc"].T + params["b_fc"]


# ----------------------------------------------------------------------------
# Deterministic parameter construction (shapes from nn.LSTM / LayerNorm / Linear).
# ----------------------------------------------------------------------------
def init_params(key, embed_dim=1, hidden_dim=32, output_dim=1):
    ks = jax.random.split(key, 6)
    bound = 1.0 / math.sqrt(hidden_dim)

    def u(k, shape):
        return jax.random.uniform(k, shape, jnp.float32, -bound, bound)

    return {
        "w_ih": u(ks[0], (4 * hidden_dim, embed_dim)),
        "w_hh": u(ks[1], (4 * hidden_dim, hidden_dim)),
        "b_ih": u(ks[2], (4 * hidden_dim,)),
        "b_hh": u(ks[3], (4 * hidden_dim,)),
        "gamma": jnp.ones((hidden_dim,), jnp.float32),
        "beta": jnp.zeros((hidden_dim,), jnp.float32),
        "w_fc": u(ks[4], (output_dim, hidden_dim)),
        "b_fc": u(ks[5], (output_dim,)),
    }


if __name__ == "__main__":
    B, T, E, H, O = 2, 8, 1, 32, 1
    key = jax.random.PRNGKey(0)
    k_param, k_x = jax.random.split(key)
    params = init_params(k_param, embed_dim=E, hidden_dim=H, output_dim=O)
    x = jax.random.normal(k_x, (B, T, E), jnp.float32)

    forward = make_lstm_forward(params)     # preprocess once, jit once
    out = jax.block_until_ready(forward(x))

    ref = reference_forward(x, params)
    assert out.shape == (B, O), out.shape
    assert jnp.allclose(out, ref, atol=1e-5, rtol=1e-5), (out, ref)

    print("KERNEL_OK")
</pallas_src>

<mosaic_0001>
module attributes {stable_mosaic.version = 11 : i64} {
  func.func @kernel(%arg0: memref<8x8xf32, #tpu.memory_space<vmem>>, %arg1: memref<1x128xf32, #tpu.memory_space<vmem>>, %arg2: memref<32x128xf32, #tpu.memory_space<vmem>>, %arg3: memref<1x128xf32, #tpu.memory_space<vmem>>, %arg4: memref<1x32xf32, #tpu.memory_space<vmem>>, %arg5: memref<1x32xf32, #tpu.memory_space<vmem>>, %arg6: memref<1x32xf32, #tpu.memory_space<vmem>>, %arg7: memref<1x1xf32, #tpu.memory_space<vmem>>, %arg8: memref<8x128xf32, #tpu.memory_space<vmem>>) attributes {dimension_semantics = [], scalar_prefetch = 0 : i64, scratch_operands = 0 : i64, tpu.core_type = #tpu.core_type<tc>} {
    %c0 = arith.constant 0 : index
    %c0_0 = arith.constant 0 : index
    %0 = vector.load %arg0[%c0, %c0_0] : memref<8x8xf32, #tpu.memory_space<vmem>>, vector<8x8xf32>
    %c0_1 = arith.constant 0 : index
    %c0_2 = arith.constant 0 : index
    %1 = vector.load %arg1[%c0_1, %c0_2] : memref<1x128xf32, #tpu.memory_space<vmem>>, vector<1x128xf32>
    %c0_3 = arith.constant 0 : index
    %c0_4 = arith.constant 0 : index
    %2 = vector.load %arg2[%c0_3, %c0_4] : memref<32x128xf32, #tpu.memory_space<vmem>>, vector<32x128xf32>
    %c0_5 = arith.constant 0 : index
    %c0_6 = arith.constant 0 : index
    %3 = vector.load %arg3[%c0_5, %c0_6] : memref<1x128xf32, #tpu.memory_space<vmem>>, vector<1x128xf32>
    %cst = arith.constant 0.000000e+00 : f32
    %4 = vector.broadcast %cst : f32 to vector<8x32xf32>
    %cst_7 = arith.constant 0.000000e+00 : f32
    %5 = vector.broadcast %cst_7 : f32 to vector<8x32xf32>
    %6 = vector.extract_strided_slice %0 {offsets = [0, 0], sizes = [8, 1], strides = [1, 1]} : vector<8x8xf32> to vector<8x1xf32>
    %7 = vector.broadcast %6 : vector<8x1xf32> to vector<8x128xf32>
    %8 = vector.broadcast %1 : vector<1x128xf32> to vector<8x128xf32>
    %9 = arith.mulf %7, %8 : vector<8x128xf32>
    %10 = vector.broadcast %3 : vector<1x128xf32> to vector<8x128xf32>
    %11 = arith.addf %9, %10 : vector<8x128xf32>
    %cst_8 = arith.constant dense<0.000000e+00> : vector<8x128xf32>
    %12 = tpu.matmul %4, %2, %cst_8 {dimension_numbers = #tpu.dot_dimension_numbers<[1], [0], [0], [1], [0, 0, 1, 1], [], []>} : vector<8x32xf32>, vector<32x128xf32>, vector<8x128xf32> -> vector<8x128xf32>
    %13 = arith.addf %11, %12 : vector<8x128xf32>
    %14 = arith.negf %13 : vector<8x128xf32>
    %15 = math.exp %14 : vector<8x128xf32>
    %cst_9 = arith.constant 1.000000e+00 : f32
    %16 = vector.broadcast %cst_9 : f32 to vector<8x128xf32>
    %17 = arith.addf %16, %15 : vector<8x128xf32>
    %18 = arith.divf %16, %17 : vector<8x128xf32>
    %19 = vector.extract_strided_slice %18 {offsets = [0, 0], sizes = [8, 32], strides = [1, 1]} : vector<8x128xf32> to vector<8x32xf32>
    %20 = vector.extract_strided_slice %18 {offsets = [0, 32], sizes = [8, 32], strides = [1, 1]} : vector<8x128xf32> to vector<8x32xf32>
    %21 = vector.extract_strided_slice %18 {offsets = [0, 64], sizes = [8, 32], strides = [1, 1]} : vector<8x128xf32> to vector<8x32xf32>
    %cst_10 = arith.constant 2.000000e+00 : f32
    %22 = vector.broadcast %cst_10 : f32 to vector<8x32xf32>
    %23 = arith.mulf %22, %21 : vector<8x32xf32>
    %cst_11 = arith.constant 1.000000e+00 : f32
    %24 = vector.broadcast %cst_11 : f32 to vector<8x32xf32>
    %25 = arith.subf %23, %24 : vector<8x32xf32>
    %26 = vector.extract_strided_slice %18 {offsets = [0, 96], sizes = [8, 32], strides = [1, 1]} : vector<8x128xf32> to vector<8x32xf32>
    %27 = arith.mulf %20, %5 : vector<8x32xf32>
    %28 = arith.mulf %19, %25 : vector<8x32xf32>
    %29 = arith.addf %27, %28 : vector<8x32xf32>
    %30 = math.tanh %29 : vector<8x32xf32>
    %31 = arith.mulf %26, %30 : vector<8x32xf32>
    %32 = vector.extract_strided_slice %0 {offsets = [0, 1], sizes = [8, 1], strides = [1, 1]} : vector<8x8xf32> to vector<8x1xf32>
    %33 = vector.broadcast %32 : vector<8x1xf32> to vector<8x128xf32>
    %34 = vector.broadcast %1 : vector<1x128xf32> to vector<8x128xf32>
    %35 = arith.mulf %33, %34 : vector<8x128xf32>
    %36 = vector.broadcast %3 : vector<1x128xf32> to vector<8x128xf32>
    %37 = arith.addf %35, %36 : vector<8x128xf32>
    %cst_12 = arith.constant dense<0.000000e+00> : vector<8x128xf32>
    %38 = tpu.matmul %31, %2, %cst_12 {dimension_numbers = #tpu.dot_dimension_numbers<[1], [0], [0], [1], [0, 0, 1, 1], [], []>} : vector<8x32xf32>, vector<32x128xf32>, vector<8x128xf32> -> vector<8x128xf32>
    %39 = arith.addf %37, %38 : vector<8x128xf32>
    %40 = arith.negf %39 : vector<8x128xf32>
    %41 = math.exp %40 : vector<8x128xf32>
    %cst_13 = arith.constant 1.000000e+00 : f32
    %42 = vector.broadcast %cst_13 : f32 to vector<8x128xf32>
    %43 = arith.addf %42, %41 : vector<8x128xf32>
    %44 = arith.divf %42, %43 : vector<8x128xf32>
    %45 = vector.extract_strided_slice %44 {offsets = [0, 0], sizes = [8, 32], strides = [1, 1]} : vector<8x128xf32> to vector<8x32xf32>
    %46 = vector.extract_strided_slice %44 {offsets = [0, 32], sizes = [8, 32], strides = [1, 1]} : vector<8x128xf32> to vector<8x32xf32>
    %47 = vector.extract_strided_slice %44 {offsets = [0, 64], sizes = [8, 32], strides = [1, 1]} : vector<8x128xf32> to vector<8x32xf32>
    %cst_14 = arith.constant 2.000000e+00 : f32
    %48 = vector.broadcast %cst_14 : f32 to vector<8x32xf32>
    %49 = arith.mulf %48, %47 : vector<8x32xf32>
    %cst_15 = arith.constant 1.000000e+00 : f32
    %50 = vector.broadcast %cst_15 : f32 to vector<8x32xf32>
    %51 = arith.subf %49, %50 : vector<8x32xf32>
    %52 = vector.extract_strided_slice %44 {offsets = [0, 96], sizes = [8, 32], strides = [1, 1]} : vector<8x128xf32> to vector<8x32xf32>
    %53 = arith.mulf %46, %29 : vector<8x32xf32>
    %54 = arith.mulf %45, %51 : vector<8x32xf32>
    %55 = arith.addf %53, %54 : vector<8x32xf32>
    %56 = math.tanh %55 : vector<8x32xf32>
    %57 = arith.mulf %52, %56 : vector<8x32xf32>
    %58 = vector.extract_strided_slice %0 {offsets = [0, 2], sizes = [8, 1], strides = [1, 1]} : vector<8x8xf32> to vector<8x1xf32>
    %59 = vector.broadcast %58 : vector<8x1xf32> to vector<8x128xf32>
    %60 = vector.broadcast %1 : vector<1x128xf32> to vector<8x128xf32>
    %61 = arith.mulf %59, %60 : vector<8x128xf32>
    %62 = vector.broadcast %3 : vector<1x128xf32> to vector<8x128xf32>
    %63 = arith.addf %61, %62 : vector<8x128xf32>
    %cst_16 = arith.constant dense<0.000000e+00> : vector<8x128xf32>
    %64 = tpu.matmul %57, %2, %cst_16 {dimension_numbers = #tpu.dot_dimension_numbers<[1], [0], [0], [1], [0, 0, 1, 1], [], []>} : vector<8x32xf32>, vector<32x128xf32>, vector<8x128xf32> -> vector<8x128xf32>
    %65 = arith.addf %63, %64 : vector<8x128xf32>
    %66 = arith.negf %65 : vector<8x128xf32>
    %67 = math.exp %66 : vector<8x128xf32>
    %cst_17 = arith.constant 1.000000e+00 : f32
    %68 = vector.broadcast %cst_17 : f32 to vector<8x128xf32>
    %69 = arith.addf %68, %67 : vector<8x128xf32>
    %70 = arith.divf %68, %69 : vector<8x128xf32>
    %71 = vector.extract_strided_slice %70 {offsets = [0, 0], sizes = [8, 32], strides = [1, 1]} : vector<8x128xf32> to vector<8x32xf32>
    %72 = vector.extract_strided_slice %70 {offsets = [0, 32], sizes = [8, 32], strides = [1, 1]} : vector<8x128xf32> to vector<8x32xf32>
    %73 = vector.extract_strided_slice %70 {offsets = [0, 64], sizes = [8, 32], strides = [1, 1]} : vector<8x128xf32> to vector<8x32xf32>
    %cst_18 = arith.constant 2.000000e+00 : f32
    %74 = vector.broadcast %cst_18 : f32 to vector<8x32xf32>
    %75 = arith.mulf %74, %73 : vector<8x32xf32>
    %cst_19 = arith.constant 1.000000e+00 : f32
    %76 = vector.broadcast %cst_19 : f32 to vector<8x32xf32>
    %77 = arith.subf %75, %76 : vector<8x32xf32>
    %78 = vector.extract_strided_slice %70 {offsets = [0, 96], sizes = [8, 32], strides = [1, 1]} : vector<8x128xf32> to vector<8x32xf32>
    %79 = arith.mulf %72, %55 : vector<8x32xf32>
    %80 = arith.mulf %71, %77 : vector<8x32xf32>
    %81 = arith.addf %79, %80 : vector<8x32xf32>
    %82 = math.tanh %81 : vector<8x32xf32>
    %83 = arith.mulf %78, %82 : vector<8x32xf32>
    %84 = vector.extract_strided_slice %0 {offsets = [0, 3], sizes = [8, 1], strides = [1, 1]} : vector<8x8xf32> to vector<8x1xf32>
    %85 = vector.broadcast %84 : vector<8x1xf32> to vector<8x128xf32>
    %86 = vector.broadcast %1 : vector<1x128xf32> to vector<8x128xf32>
    %87 = arith.mulf %85, %86 : vector<8x128xf32>
    %88 = vector.broadcast %3 : vector<1x128xf32> to vector<8x128xf32>
    %89 = arith.addf %87, %88 : vector<8x128xf32>
    %cst_20 = arith.constant dense<0.000000e+00> : vector<8x128xf32>
    %90 = tpu.matmul %83, %2, %cst_20 {dimension_numbers = #tpu.dot_dimension_numbers<[1], [0], [0], [1], [0, 0, 1, 1], [], []>} : vector<8x32xf32>, vector<32x128xf32>, vector<8x128xf32> -> vector<8x128xf32>
    %91 = arith.addf %89, %90 : vector<8x128xf32>
    %92 = arith.negf %91 : vector<8x128xf32>
    %93 = math.exp %92 : vector<8x128xf32>
    %cst_21 = arith.constant 1.000000e+00 : f32
    %94 = vector.broadcast %cst_21 : f32 to vector<8x128xf32>
    %95 = arith.addf %94, %93 : vector<8x128xf32>
    %96 = arith.divf %94, %95 : vector<8x128xf32>
    %97 = vector.extract_strided_slice %96 {offsets = [0, 0], sizes = [8, 32], strides = [1, 1]} : vector<8x128xf32> to vector<8x32xf32>
    %98 = vector.extract_strided_slice %96 {offsets = [0, 32], sizes = [8, 32], strides = [1, 1]} : vector<8x128xf32> to vector<8x32xf32>
    %99 = vector.extract_strided_slice %96 {offsets = [0, 64], sizes = [8, 32], strides = [1, 1]} : vector<8x128xf32> to vector<8x32xf32>
    %cst_22 = arith.constant 2.000000e+00 : f32
    %100 = vector.broadcast %cst_22 : f32 to vector<8x32xf32>
    %101 = arith.mulf %100, %99 : vector<8x32xf32>
    %cst_23 = arith.constant 1.000000e+00 : f32
    %102 = vector.broadcast %cst_23 : f32 to vector<8x32xf32>
    %103 = arith.subf %101, %102 : vector<8x32xf32>
    %104 = vector.extract_strided_slice %96 {offsets = [0, 96], sizes = [8, 32], strides = [1, 1]} : vector<8x128xf32> to vector<8x32xf32>
    %105 = arith.mulf %98, %81 : vector<8x32xf32>
    %106 = arith.mulf %97, %103 : vector<8x32xf32>
    %107 = arith.addf %105, %106 : vector<8x32xf32>
    %108 = math.tanh %107 : vector<8x32xf32>
    %109 = arith.mulf %104, %108 : vector<8x32xf32>
    %110 = vector.extract_strided_slice %0 {offsets = [0, 4], sizes = [8, 1], strides = [1, 1]} : vector<8x8xf32> to vector<8x1xf32>
    %111 = vector.broadcast %110 : vector<8x1xf32> to vector<8x128xf32>
    %112 = vector.broadcast %1 : vector<1x128xf32> to vector<8x128xf32>
    %113 = arith.mulf %111, %112 : vector<8x128xf32>
    %114 = vector.broadcast %3 : vector<1x128xf32> to vector<8x128xf32>
    %115 = arith.addf %113, %114 : vector<8x128xf32>
    %cst_24 = arith.constant dense<0.000000e+00> : vector<8x128xf32>
    %116 = tpu.matmul %109, %2, %cst_24 {dimension_numbers = #tpu.dot_dimension_numbers<[1], [0], [0], [1], [0, 0, 1, 1], [], []>} : vector<8x32xf32>, vector<32x128xf32>, vector<8x128xf32> -> vector<8x128xf32>
    %117 = arith.addf %115, %116 : vector<8x128xf32>
    %118 = arith.negf %117 : vector<8x128xf32>
    %119 = math.exp %118 : vector<8x128xf32>
    %cst_25 = arith.constant 1.000000e+00 : f32
    %120 = vector.broadcast %cst_25 : f32 to vector<8x128xf32>
    %121 = arith.addf %120, %119 : vector<8x128xf32>
    %122 = arith.divf %120, %121 : vector<8x128xf32>
    %123 = vector.extract_strided_slice %122 {offsets = [0, 0], sizes = [8, 32], strides = [1, 1]} : vector<8x128xf32> to vector<8x32xf32>
    %124 = vector.extract_strided_slice %122 {offsets = [0, 32], sizes = [8, 32], strides = [1, 1]} : vector<8x128xf32> to vector<8x32xf32>
    %125 = vector.extract_strided_slice %122 {offsets = [0, 64], sizes = [8, 32], strides = [1, 1]} : vector<8x128xf32> to vector<8x32xf32>
    %cst_26 = arith.constant 2.000000e+00 : f32
    %126 = vector.broadcast %cst_26 : f32 to vector<8x32xf32>
    %127 = arith.mulf %126, %125 : vector<8x32xf32>
    %cst_27 = arith.constant 1.000000e+00 : f32
    %128 = vector.broadcast %cst_27 : f32 to vector<8x32xf32>
    %129 = arith.subf %127, %128 : vector<8x32xf32>
    %130 = vector.extract_strided_slice %122 {offsets = [0, 96], sizes = [8, 32], strides = [1, 1]} : vector<8x128xf32> to vector<8x32xf32>
    %131 = arith.mulf %124, %107 : vector<8x32xf32>
    %132 = arith.mulf %123, %129 : vector<8x32xf32>
    %133 = arith.addf %131, %132 : vector<8x32xf32>
    %134 = math.tanh %133 : vector<8x32xf32>
    %135 = arith.mulf %130, %134 : vector<8x32xf32>
    %136 = vector.extract_strided_slice %0 {offsets = [0, 5], sizes = [8, 1], strides = [1, 1]} : vector<8x8xf32> to vector<8x1xf32>
    %137 = vector.broadcast %136 : vector<8x1xf32> to vector<8x128xf32>
    %138 = vector.broadcast %1 : vector<1x128xf32> to vector<8x128xf32>
    %139 = arith.mulf %137, %138 : vector<8x128xf32>
    %140 = vector.broadcast %3 : vector<1x128xf32> to vector<8x128xf32>
    %141 = arith.addf %139, %140 : vector<8x128xf32>
    %cst_28 = arith.constant dense<0.000000e+00> : vector<8x128xf32>
    %142 = tpu.matmul %135, %2, %cst_28 {dimension_numbers = #tpu.dot_dimension_numbers<[1], [0], [0], [1], [0, 0, 1, 1], [], []>} : vector<8x32xf32>, vector<32x128xf32>, vector<8x128xf32> -> vector<8x128xf32>
    %143 = arith.addf %141, %142 : vector<8x128xf32>
    %144 = arith.negf %143 : vector<8x128xf32>
    %145 = math.exp %144 : vector<8x128xf32>
    %cst_29 = arith.constant 1.000000e+00 : f32
    %146 = vector.broadcast %cst_29 : f32 to vector<8x128xf32>
    %147 = arith.addf %146, %145 : vector<8x128xf32>
    %148 = arith.divf %146, %147 : vector<8x128xf32>
    %149 = vector.extract_strided_slice %148 {offsets = [0, 0], sizes = [8, 32], strides = [1, 1]} : vector<8x128xf32> to vector<8x32xf32>
    %150 = vector.extract_strided_slice %148 {offsets = [0, 32], sizes = [8, 32], strides = [1, 1]} : vector<8x128xf32> to vector<8x32xf32>
    %151 = vector.extract_strided_slice %148 {offsets = [0, 64], sizes = [8, 32], strides = [1, 1]} : vector<8x128xf32> to vector<8x32xf32>
    %cst_30 = arith.constant 2.000000e+00 : f32
    %152 = vector.broadcast %cst_30 : f32 to vector<8x32xf32>
    %153 = arith.mulf %152, %151 : vector<8x32xf32>
    %cst_31 = arith.constant 1.000000e+00 : f32
    %154 = vector.broadcast %cst_31 : f32 to vector<8x32xf32>
    %155 = arith.subf %153, %154 : vector<8x32xf32>
    %156 = vector.extract_strided_slice %148 {offsets = [0, 96], sizes = [8, 32], strides = [1, 1]} : vector<8x128xf32> to vector<8x32xf32>
    %157 = arith.mulf %150, %133 : vector<8x32xf32>
    %158 = arith.mulf %149, %155 : vector<8x32xf32>
    %159 = arith.addf %157, %158 : vector<8x32xf32>
    %160 = math.tanh %159 : vector<8x32xf32>
    %161 = arith.mulf %156, %160 : vector<8x32xf32>
    %162 = vector.extract_strided_slice %0 {offsets = [0, 6], sizes = [8, 1], strides = [1, 1]} : vector<8x8xf32> to vector<8x1xf32>
    %163 = vector.broadcast %162 : vector<8x1xf32> to vector<8x128xf32>
    %164 = vector.broadcast %1 : vector<1x128xf32> to vector<8x128xf32>
    %165 = arith.mulf %163, %164 : vector<8x128xf32>
    %166 = vector.broadcast %3 : vector<1x128xf32> to vector<8x128xf32>
    %167 = arith.addf %165, %166 : vector<8x128xf32>
    %cst_32 = arith.constant dense<0.000000e+00> : vector<8x128xf32>
    %168 = tpu.matmul %161, %2, %cst_32 {dimension_numbers = #tpu.dot_dimension_numbers<[1], [0], [0], [1], [0, 0, 1, 1], [], []>} : vector<8x32xf32>, vector<32x128xf32>, vector<8x128xf32> -> vector<8x128xf32>
    %169 = arith.addf %167, %168 : vector<8x128xf32>
    %170 = arith.negf %169 : vector<8x128xf32>
    %171 = math.exp %170 : vector<8x128xf32>
    %cst_33 = arith.constant 1.000000e+00 : f32
    %172 = vector.broadcast %cst_33 : f32 to vector<8x128xf32>
    %173 = arith.addf %172, %171 : vector<8x128xf32>
    %174 = arith.divf %172, %173 : vector<8x128xf32>
    %175 = vector.extract_strided_slice %174 {offsets = [0, 0], sizes = [8, 32], strides = [1, 1]} : vector<8x128xf32> to vector<8x32xf32>
    %176 = vector.extract_strided_slice %174 {offsets = [0, 32], sizes = [8, 32], strides = [1, 1]} : vector<8x128xf32> to vector<8x32xf32>
    %177 = vector.extract_strided_slice %174 {offsets = [0, 64], sizes = [8, 32], strides = [1, 1]} : vector<8x128xf32> to vector<8x32xf32>
    %cst_34 = arith.constant 2.000000e+00 : f32
    %178 = vector.broadcast %cst_34 : f32 to vector<8x32xf32>
    %179 = arith.mulf %178, %177 : vector<8x32xf32>
    %cst_35 = arith.constant 1.000000e+00 : f32
    %180 = vector.broadcast %cst_35 : f32 to vector<8x32xf32>
    %181 = arith.subf %179, %180 : vector<8x32xf32>
    %182 = vector.extract_strided_slice %174 {offsets = [0, 96], sizes = [8, 32], strides = [1, 1]} : vector<8x128xf32> to vector<8x32xf32>
    %183 = arith.mulf %176, %159 : vector<8x32xf32>
    %184 = arith.mulf %175, %181 : vector<8x32xf32>
    %185 = arith.addf %183, %184 : vector<8x32xf32>
    %186 = math.tanh %185 : vector<8x32xf32>
    %187 = arith.mulf %182, %186 : vector<8x32xf32>
    %188 = vector.extract_strided_slice %0 {offsets = [0, 7], sizes = [8, 1], strides = [1, 1]} : vector<8x8xf32> to vector<8x1xf32>
    %189 = vector.broadcast %188 : vector<8x1xf32> to vector<8x128xf32>
    %190 = vector.broadcast %1 : vector<1x128xf32> to vector<8x128xf32>
    %191 = arith.mulf %189, %190 : vector<8x128xf32>
    %192 = vector.broadcast %3 : vector<1x128xf32> to vector<8x128xf32>
    %193 = arith.addf %191, %192 : vector<8x128xf32>
    %cst_36 = arith.constant dense<0.000000e+00> : vector<8x128xf32>
    %194 = tpu.matmul %187, %2, %cst_36 {dimension_numbers = #tpu.dot_dimension_numbers<[1], [0], [0], [1], [0, 0, 1, 1], [], []>} : vector<8x32xf32>, vector<32x128xf32>, vector<8x128xf32> -> vector<8x128xf32>
    %195 = arith.addf %193, %194 : vector<8x128xf32>
    %196 = arith.negf %195 : vector<8x128xf32>
    %197 = math.exp %196 : vector<8x128xf32>
    %cst_37 = arith.constant 1.000000e+00 : f32
    %198 = vector.broadcast %cst_37 : f32 to vector<8x128xf32>
    %199 = arith.addf %198, %197 : vector<8x128xf32>
    %200 = arith.divf %198, %199 : vector<8x128xf32>
    %201 = vector.extract_strided_slice %200 {offsets = [0, 0], sizes = [8, 32], strides = [1, 1]} : vector<8x128xf32> to vector<8x32xf32>
    %202 = vector.extract_strided_slice %200 {offsets = [0, 32], sizes = [8, 32], strides = [1, 1]} : vector<8x128xf32> to vector<8x32xf32>
    %203 = vector.extract_strided_slice %200 {offsets = [0, 64], sizes = [8, 32], strides = [1, 1]} : vector<8x128xf32> to vector<8x32xf32>
    %cst_38 = arith.constant 2.000000e+00 : f32
    %204 = vector.broadcast %cst_38 : f32 to vector<8x32xf32>
    %205 = arith.mulf %204, %203 : vector<8x32xf32>
    %cst_39 = arith.constant 1.000000e+00 : f32
    %206 = vector.broadcast %cst_39 : f32 to vector<8x32xf32>
    %207 = arith.subf %205, %206 : vector<8x32xf32>
    %208 = vector.extract_strided_slice %200 {offsets = [0, 96], sizes = [8, 32], strides = [1, 1]} : vector<8x128xf32> to vector<8x32xf32>
    %209 = arith.mulf %202, %185 : vector<8x32xf32>
    %210 = arith.mulf %201, %207 : vector<8x32xf32>
    %211 = arith.addf %209, %210 : vector<8x32xf32>
    %212 = math.tanh %211 : vector<8x32xf32>
    %213 = arith.mulf %208, %212 : vector<8x32xf32>
    %cst_40 = arith.constant dense<0.000000e+00> : vector<8xf32>
    %214 = vector.multi_reduction <add>, %213, %cst_40 [1] : vector<8x32xf32> to vector<8xf32>
    %215 = vector.shape_cast %214 : vector<8xf32> to vector<8x1xf32>
    %cst_41 = arith.constant 3.200000e+01 : f32
    %216 = vector.broadcast %cst_41 : f32 to vector<8x1xf32>
    %217 = arith.divf %215, %216 : vector<8x1xf32>
    %218 = vector.broadcast %217 : vector<8x1xf32> to vector<8x32xf32>
    %219 = arith.subf %213, %218 : vector<8x32xf32>
    %220 = arith.mulf %219, %219 : vector<8x32xf32>
    %cst_42 = arith.constant dense<0.000000e+00> : vector<8xf32>
    %221 = vector.multi_reduction <add>, %220, %cst_42 [1] : vector<8x32xf32> to vector<8xf32>
    %222 = vector.shape_cast %221 : vector<8xf32> to vector<8x1xf32>
    %cst_43 = arith.constant 3.200000e+01 : f32
    %223 = vector.broadcast %cst_43 : f32 to vector<8x1xf32>
    %224 = arith.divf %222, %223 : vector<8x1xf32>
    %225 = vector.broadcast %217 : vector<8x1xf32> to vector<8x32xf32>
    %226 = arith.subf %213, %225 : vector<8x32xf32>
    %cst_44 = arith.constant 9.99999974E-6 : f32
    %227 = vector.broadcast %cst_44 : f32 to vector<8x1xf32>
    %228 = arith.addf %224, %227 : vector<8x1xf32>
    %229 = math.rsqrt %228 : vector<8x1xf32>
    %230 = vector.broadcast %229 : vector<8x1xf32> to vector<8x32xf32>
    %231 = arith.mulf %226, %230 : vector<8x32xf32>
    %c0_45 = arith.constant 0 : index
    %c0_46 = arith.constant 0 : index
    %232 = vector.load %arg4[%c0_45, %c0_46] : memref<1x32xf32, #tpu.memory_space<vmem>>, vector<1x32xf32>
    %233 = vector.broadcast %232 : vector<1x32xf32> to vector<8x32xf32>
    %234 = arith.mulf %231, %233 : vector<8x32xf32>
    %c0_47 = arith.constant 0 : index
    %c0_48 = arith.constant 0 : index
    %235 = vector.load %arg5[%c0_47, %c0_48] : memref<1x32xf32, #tpu.memory_space<vmem>>, vector<1x32xf32>
    %236 = vector.broadcast %235 : vector<1x32xf32> to vector<8x32xf32>
    %237 = arith.addf %234, %236 : vector<8x32xf32>
    %c0_49 = arith.constant 0 : index
    %c0_50 = arith.constant 0 : index
    %238 = vector.load %arg6[%c0_49, %c0_50] : memref<1x32xf32, #tpu.memory_space<vmem>>, vector<1x32xf32>
    %239 = vector.broadcast %238 : vector<1x32xf32> to vector<8x32xf32>
    %240 = arith.mulf %237, %239 : vector<8x32xf32>
    %cst_51 = arith.constant dense<0.000000e+00> : vector<8xf32>
    %241 = vector.multi_reduction <add>, %240, %cst_51 [1] : vector<8x32xf32> to vector<8xf32>
    %242 = vector.shape_cast %241 : vector<8xf32> to vector<8x1xf32>
    %c0_52 = arith.constant 0 : index
    %c0_53 = arith.constant 0 : index
    %243 = vector.load %arg7[%c0_52, %c0_53] : memref<1x1xf32, #tpu.memory_space<vmem>>, vector<1x1xf32>
    %244 = vector.broadcast %243 : vector<1x1xf32> to vector<8x1xf32>
    %245 = arith.addf %242, %244 : vector<8x1xf32>
    %246 = vector.shape_cast %245 : vector<8x1xf32> to vector<8x1xf32>
    %247 = vector.broadcast %246 : vector<8x1xf32> to vector<8x128xf32>
    %c0_54 = arith.constant 0 : index
    %c0_55 = arith.constant 0 : index
    %248 = vector.load %arg8[%c0_54, %c0_55] : memref<8x128xf32, #tpu.memory_space<vmem>>, vector<8x128xf32>
    tpu.vector_store %arg8[%c0_54, %c0_55], %247 {strides = array<i32>} : memref<8x128xf32, #tpu.memory_space<vmem>>, vector<8x128xf32>,
    return
  }
}

</mosaic_0001>

<bundles_post_ra>
// kernel: forward.1
= control target key start
LH: loop header
LB: loop body
LE: loop exit
PB: predicated region body
PF: predicated region fallthrough
CT: control target
= control target key end

     0   :  { %s1533_s0 = inlined_call_operand.vmem [shape: f32[8,8], index: 0, kind: input, shape index: {}]   ;;  %s1534_s1 = inlined_call_operand.hbm [shape: f32[1,128], index: 1, kind: input, shape index: {}]   ;;  %s1535_s2 = inlined_call_operand.vmem [shape: f32[32,128], index: 2, kind: input, shape index: {}]   ;;  %s1536_s3 = inlined_call_operand.vmem [shape: f32[1,128], index: 3, kind: input, shape index: {}]   ;;  %s1537_s4 = inlined_call_operand.vmem [shape: f32[1,32], index: 4, kind: input, shape index: {}]   ;;  %s1538_s5 = inlined_call_operand.vmem [shape: f32[1,32], index: 5, kind: input, shape index: {}]   ;;  %s1539_s6 = inlined_call_operand.vmem [shape: f32[1,32], index: 6, kind: input, shape index: {}]   ;;  %s1540_s7 = inlined_call_operand.<no memory space> [shape: f32[1,1], index: 7, kind: input, shape index: {}]   ;;  %s1541_s8 = inlined_call_operand.vmem [shape: f32[8,128], index: 8, kind: output, shape index: {}]  }
   0x1   :  { %v13_v0 = vstv %s1540_s7 }
   0x2   :  { %14 = vst [vmem:[#allocation2] sm:$0x1] %v13_v0 }
   0x3   :  { %15 = vsyncpa [#allocation4], 0  ;;  %s1299_s29 = smov [#allocation3]   ;;  %s1275_s11 = scalar_lea.hbm %s1534_s1, 16 }
   0x4   :  { %s24_s30 = sshll.u32 %s1299_s29, 4  ;;  %p1276_p0 = scmp.ne.s32.totalorder %s1534_s1, %s1275_s11  ;;  %s25_s30 = int_to_ptr.vmem [resolvable:$true] %s24_s30 }
   0x5   :  { %p1279_p1 = scmp.lt.u32.totalorder %s1275_s11, %s1534_s1 }
   0x7   :  { %p1281_p2 = pnand %p1279_p1, %p1276_p0 }
   0x9   :  { %1284 = shalt.err (!%p1281_p2)
}
   0xa   :  { %s1285_s7 = scalar_lea.vmem %s25_s30, 16  ;;  %s1289_s16 = scalar_lea.vmem %s25_s30, 32 }
   0xb   :  { %p1286_p3 = scmp.ne.s32.totalorder %s25_s30, %s1285_s7  ;;  %p1290_p4 = scmp.lt.s32.totalorder %s25_s30, %s25_s30 }
   0xc   :  { %p1291_p5 = scmp.lt.s32.totalorder %s1289_s16, %s1285_s7 }
   0xe   :  { %p1292_p6 = por %p1291_p5, %p1290_p4 }
  0x10   :  { %p1293_p7 = pnand %p1292_p6, %p1286_p3 }
  0x12   :  { %1296 = shalt.err (!%p1293_p7)
}
  0x13   :  { %27 = dma.hbm_to_vmem [thread:$0]  %s1534_s1, 16, %s25_s30, [#allocation4]  }
  0x14   :  { %1297 = dma.done.wait [#allocation4], 16  }
  0x15   :  { %1298 = vsyncadd [#allocation4], 4294967280  ;;  %v1300_v1 = vmov 0.0|0.0   ;;  %vm1301_vm0 = vmmov 0   ;;  %v1302_v2 = vmov 0.0   ;;  %v1303_v3 = vmov 0  }
  0x16   :  { %1153 = vmatprep.subr.bf16.mxu0 %v1300_v1  ;;  %1073 = vmatprep.mubr.msk.f32.mxu0 %vm1301_vm0, %v1302_v2  ;;  %v45_v4 = vld [vmem:[%s1535_s2] sm:$0xff]  ;;  %v46_v5 = vld [vmem:[%s1535_s2 + $0x8] sm:$0xff]  ;;  %v47_v6 = vld [vmem:[%s1535_s2 + $0x10] sm:$0xff]  ;;  %s1304_s28 = smov 64   ;;  %v1306_v31 = vmov 1   ;;  %vm69_vm1 = vcmask 261120  }
  0x17   :  { %1216 = vset.pattern.permute.xlu0 %v1303_v3  ;;  %1159 = vmatprep.subr.bf16.mxu1 %v1300_v1  ;;  %v1390_v7 = vpack.c.bf16 %v46_v5, %v45_v4  ;;  %v48_v8 = vld [vmem:[%s1535_s2 + $0x18] sm:$0xff]  ;;  %v1398_v9 = vld [vmem:[%s1533_s0] sm:$0xff]  ;;  %v1307_v53 = vmov 2   ;;  %s1313_s9 = smov 96  }
  0x18   :  { %1084 = vmatprep.mubr.msk.f32.mxu1 %vm1301_vm0, %v1302_v2  ;;  %52 = vperm.xlu0 %1216, %v1398_v9   ;;  %v1402_v10 = vpack.c.bf16 %v48_v8, %v47_v6  ;;  %v1418_v11 = vld [vmem:[#allocation3] ss:$0 sm:$0xff]  ;;  %v1424_v14 = vld [vmem:[%s1536_s3] ss:$0 sm:$0xff]  ;;  %s1305_s3 = smov 32  }
  0x19   :  { %1155 = vmatpush3.bf16.msra.mxu0 %v1390_v7  ;;  %1161 = vmatpush3.bf16.msra.mxu1 %v1390_v7 }
  0x1a   :  { %1156 = vmatprep.subr.bf16.mxu0 %v1300_v1  ;;  %1162 = vmatprep.subr.bf16.mxu1 %v1300_v1 }
  0x1b   :  { %1217 = vset.pattern.permute.xlu1 %v1306_v31 }
  0x1c   :  { %1218 = vset.pattern.permute.xlu0 %v1307_v53 }
  0x1d   :  { %1158 = vmatpush3.bf16.msra.mxu0 %v1402_v10  ;;  %1164 = vmatpush3.bf16.msra.mxu1 %v1402_v10 }
  0x1e   :  { %1165 = vmatprep.subr.bf16.mxu0 %v1300_v1  ;;  %1171 = vmatprep.subr.bf16.mxu1 %v1300_v1 }
  0x20   :  { %1074 = vmatmul.mubr.f32.vlgmr.msra.gmra.mrb[0].mxu0 %v1302_v2 }
  0x21   :  { %1167 = vmatpush3.bf16.msra.mxu0 %v1390_v7  ;;  %1095 = vmatprep.mubr.msk.f32.mxu0 %vm1301_vm0, %v1302_v2 }
  0x22   :  { %1168 = vmatprep.subr.bf16.mxu0 %v1300_v1 }
  0x25   :  { %1170 = vmatpush3.bf16.msra.mxu0 %v1402_v10 }
  0x26   :  { %1177 = vmatprep.subr.bf16.mxu0 %v1300_v1 }
  0x97   :  { %v53_v12 = vpop.permute.xlu0 %52 }
  0x98   :  { %v61_v13 = vmul.f32 %v1418_v11, %v53_v12 }
  0x9a   :  { %v68_v15 = vadd.f32 %v1424_v14, %v61_v13 }
  0xf3   :  { %v139_v16 = vpop.f32.mrb[0].mxu0 }
  0xf4   :  { %v143_v17 = vadd.f32 %v139_v16, %v68_v15  ;;  %v1075_v18 = vpop.f32.mrb[1].mxu0 }
  0xf6   :  { %v998_v19 = vmul.f32 -1.442695, %v143_v17 }
  0xf8   :  { %1225 = vpow2.f32 %v998_v19  ;;  %v1308_v19 = vmov 3  }
 0x102   :  { %v1226_v20 = vpop.eup %1225 }
 0x103   :  { %v147_v21 = vadd.f32 1.0, %v1226_v20 }
 0x105   :  { %1227 = vrcp.f32 %v147_v21 }
 0x10f   :  { %v1228_v22 = vpop.eup %1227 }
 0x110   :  { %v150_v23 = vmul.f32 2.0, %v1228_v22  ;;  %v152_v27 = vmul.f32 0.0, %v1228_v22 }
 0x112   :  { %v999_v24 = vadd.f32 -1.0, %v150_v23 }
 0x114   :  { %154 = vrot.lane.b32.xlu0 %v999_v24, %s1304_s28 }
 0x186   :  { %v155_v25 = vpop.permute.xlu0 %154 }
 0x187   :  { %v157_v26 = vmul.f32 %v1228_v22, %v155_v25 }
 0x189   :  { %159 = vrot.lane.b32.xlu1 %v157_v26, %s1305_s3 }
 0x1fb   :  { %v160_v28 = vpop.permute.xlu1 %159 }
 0x1fc   :  { %v162_v29 = vadd.f32 %v160_v28, %v152_v27 }
 0x1fe   :  { %1229 = vtanh.f32 %v162_v29 }
 0x208   :  { %v1230_v30 = vpop.eup %1229 }
 0x209   :  { %165 = vrot.lane.b32.xlu1 %v1230_v30, %s1304_s28 }
 0x20d   :  { %170 = vperm.xlu1 %1217, %v1398_v9  }
 0x27b   :  { %v166_v32 = vpop.permute.xlu1 %165 }
 0x27c   :  { %v168_v33 = vmul.f32 %v1228_v22, %v166_v32 }
 0x27e   :  { %176 = vrot.lane.b32.xlu0 %v168_v33, %s1305_s3 }
 0x28c   :  { %v171_v35 = vpop.permute.xlu1 %170 }
 0x28d   :  { %v173_v36 = vmul.f32 %v1418_v11, %v171_v35 }
 0x28f   :  { %v174_v37 = vadd.f32 %v1424_v14, %v173_v36 }
 0x2f0   :  { %v177_v34 = vpop.permute.xlu0 %176 }
 0x2f1   :  { %1085 = vmatmul.mubr.msk.f32.vlgmr.msra.gmra.mrb[0].mxu1 %vm69_vm1, %v177_v34 }
 0x2f2   :  { %1173 = vmatpush3.bf16.msra.mxu1 %v1390_v7  ;;  %1106 = vmatprep.mubr.msk.f32.mxu1 %vm1301_vm0, %v1302_v2 }
 0x2f3   :  { %1174 = vmatprep.subr.bf16.mxu1 %v1300_v1 }
 0x2f6   :  { %1176 = vmatpush3.bf16.msra.mxu1 %v1402_v10 }
 0x2f7   :  { %1183 = vmatprep.subr.bf16.mxu1 %v1300_v1 }
 0x3c4   :  { %v246_v38 = vpop.f32.mrb[0].mxu1 }
 0x3c5   :  { %v250_v39 = vadd.f32 %v246_v38, %v174_v37  ;;  %v1086_v40 = vpop.f32.mrb[1].mxu1 }
 0x3c7   :  { %v1001_v41 = vmul.f32 -1.442695, %v250_v39 }
 0x3c9   :  { %1231 = vpow2.f32 %v1001_v41  ;;  %v1309_v41 = vmov 4  }
 0x3d3   :  { %v1232_v42 = vpop.eup %1231 }
 0x3d4   :  { %v254_v43 = vadd.f32 1.0, %v1232_v42 }
 0x3d6   :  { %1233 = vrcp.f32 %v254_v43 }
 0x3e0   :  { %v1234_v44 = vpop.eup %1233 }
 0x3e1   :  { %v257_v45 = vmul.f32 2.0, %v1234_v44  ;;  %v259_v49 = vmul.f32 %v1234_v44, %v162_v29 }
 0x3e3   :  { %v1002_v46 = vadd.f32 -1.0, %v257_v45 }
 0x3e5   :  { %261 = vrot.lane.b32.xlu0 %v1002_v46, %s1304_s28 }
 0x457   :  { %v262_v47 = vpop.permute.xlu0 %261 }
 0x458   :  { %v264_v48 = vmul.f32 %v1234_v44, %v262_v47 }
 0x45a   :  { %266 = vrot.lane.b32.xlu1 %v264_v48, %s1305_s3 }
 0x4cc   :  { %v267_v50 = vpop.permute.xlu1 %266 }
 0x4cd   :  { %v269_v51 = vadd.f32 %v267_v50, %v259_v49 }
 0x4cf   :  { %1235 = vtanh.f32 %v269_v51 }
 0x4d9   :  { %v1236_v52 = vpop.eup %1235 }
 0x4da   :  { %272 = vrot.lane.b32.xlu0 %v1236_v52, %s1304_s28 }
 0x4de   :  { %277 = vperm.xlu0 %1218, %v1398_v9  }
 0x4e2   :  { %1219 = vset.pattern.permute.xlu0 %v1308_v19 }
 0x54c   :  { %v273_v54 = vpop.permute.xlu0 %272 }
 0x54d   :  { %v275_v55 = vmul.f32 %v1234_v44, %v273_v54 }
 0x54f   :  { %283 = vrot.lane.b32.xlu1 %v275_v55, %s1305_s3 }
 0x55d   :  { %v278_v57 = vpop.permute.xlu0 %277 }
 0x55e   :  { %v280_v58 = vmul.f32 %v1418_v11, %v278_v57 }
 0x560   :  { %v281_v59 = vadd.f32 %v1424_v14, %v280_v58 }
 0x5c1   :  { %v284_v56 = vpop.permute.xlu1 %283 }
 0x5c2   :  { %1096 = vmatmul.mubr.msk.f32.vlgmr.msra.gmra.mrb[2].mxu0 %vm69_vm1, %v284_v56 }
 0x5c3   :  { %1179 = vmatpush3.bf16.msra.mxu0 %v1390_v7  ;;  %1117 = vmatprep.mubr.msk.f32.mxu0 %vm1301_vm0, %v1302_v2 }
 0x5c4   :  { %1180 = vmatprep.subr.bf16.mxu0 %v1300_v1 }
 0x5c7   :  { %1182 = vmatpush3.bf16.msra.mxu0 %v1402_v10 }
 0x5c8   :  { %1189 = vmatprep.subr.bf16.mxu0 %v1300_v1 }
 0x695   :  { %v353_v60 = vpop.f32.mrb[2].mxu0 }
 0x696   :  { %v357_v61 = vadd.f32 %v353_v60, %v281_v59  ;;  %v1097_v62 = vpop.f32.mrb[3].mxu0 }
 0x698   :  { %v1004_v63 = vmul.f32 -1.442695, %v357_v61 }
 0x69a   :  { %1237 = vpow2.f32 %v1004_v63  ;;  %v1310_v63 = vmov 5  }
 0x6a4   :  { %v1238_v0 = vpop.eup %1237 }
 0x6a5   :  { %v361_v4 = vadd.f32 1.0, %v1238_v0 }
 0x6a7   :  { %1239 = vrcp.f32 %v361_v4 }
 0x6b1   :  { %v1240_v5 = vpop.eup %1239 }
 0x6b2   :  { %v364_v6 = vmul.f32 2.0, %v1240_v5  ;;  %v366_v15 = vmul.f32 %v1240_v5, %v269_v51 }
 0x6b4   :  { %v1005_v8 = vadd.f32 -1.0, %v364_v6 }
 0x6b6   :  { %368 = vrot.lane.b32.xlu1 %v1005_v8, %s1304_s28 }
 0x728   :  { %v369_v12 = vpop.permute.xlu1 %368 }
 0x729   :  { %v371_v13 = vmul.f32 %v1240_v5, %v369_v12 }
 0x72b   :  { %373 = vrot.lane.b32.xlu1 %v371_v13, %s1305_s3 }
 0x79d   :  { %v374_v16 = vpop.permute.xlu1 %373 }
 0x79e   :  { %v376_v17 = vadd.f32 %v374_v16, %v366_v15 }
 0x7a0   :  { %1241 = vtanh.f32 %v376_v17 }
 0x7aa   :  { %v1242_v18 = vpop.eup %1241 }
 0x7ab   :  { %379 = vrot.lane.b32.xlu0 %v1242_v18, %s1304_s28 }
 0x7af   :  { %384 = vperm.xlu0 %1219, %v1398_v9  }
 0x7b3   :  { %1220 = vset.pattern.permute.xlu0 %v1309_v41 }
 0x81d   :  { %v380_v20 = vpop.permute.xlu0 %379 }
 0x81e   :  { %v382_v21 = vmul.f32 %v1240_v5, %v380_v20 }
 0x820   :  { %390 = vrot.lane.b32.xlu1 %v382_v21, %s1305_s3 }
 0x82e   :  { %v385_v23 = vpop.permute.xlu0 %384 }
 0x82f   :  { %v387_v24 = vmul.f32 %v1418_v11, %v385_v23 }
 0x831   :  { %v388_v25 = vadd.f32 %v1424_v14, %v387_v24 }
 0x892   :  { %v391_v22 = vpop.permute.xlu1 %390 }
 0x893   :  { %1107 = vmatmul.mubr.msk.f32.vlgmr.msra.gmra.mrb[2].mxu1 %vm69_vm1, %v391_v22 }
 0x894   :  { %1185 = vmatpush3.bf16.msra.mxu1 %v1390_v7  ;;  %1128 = vmatprep.mubr.msk.f32.mxu1 %vm1301_vm0, %v1302_v2 }
 0x895   :  { %1186 = vmatprep.subr.bf16.mxu1 %v1300_v1 }
 0x898   :  { %1188 = vmatpush3.bf16.msra.mxu1 %v1402_v10 }
 0x899   :  { %1195 = vmatprep.subr.bf16.mxu1 %v1300_v1 }
 0x966   :  { %v460_v26 = vpop.f32.mrb[2].mxu1 }
 0x967   :  { %v464_v27 = vadd.f32 %v460_v26, %v388_v25  ;;  %v1108_v28 = vpop.f32.mrb[3].mxu1  ;;  %v1311_v25 = vmov 6  }
 0x969   :  { %v1007_v29 = vmul.f32 -1.442695, %v464_v27 }
 0x96b   :  { %1243 = vpow2.f32 %v1007_v29 }
 0x975   :  { %v1244_v30 = vpop.eup %1243 }
 0x976   :  { %v468_v31 = vadd.f32 1.0, %v1244_v30 }
 0x978   :  { %1245 = vrcp.f32 %v468_v31 }
 0x982   :  { %v1246_v32 = vpop.eup %1245 }
 0x983   :  { %v471_v33 = vmul.f32 2.0, %v1246_v32  ;;  %v473_v37 = vmul.f32 %v1246_v32, %v376_v17 }
 0x985   :  { %v1008_v34 = vadd.f32 -1.0, %v471_v33 }
 0x987   :  { %475 = vrot.lane.b32.xlu1 %v1008_v34, %s1304_s28 }
 0x9f9   :  { %v476_v35 = vpop.permute.xlu1 %475 }
 0x9fa   :  { %v478_v36 = vmul.f32 %v1246_v32, %v476_v35 }
 0x9fc   :  { %480 = vrot.lane.b32.xlu1 %v478_v36, %s1305_s3 }
 0xa6e   :  { %v481_v38 = vpop.permute.xlu1 %480 }
 0xa6f   :  { %v483_v39 = vadd.f32 %v481_v38, %v473_v37 }
 0xa71   :  { %1247 = vtanh.f32 %v483_v39 }
 0xa7b   :  { %v1248_v40 = vpop.eup %1247 }
 0xa7c   :  { %486 = vrot.lane.b32.xlu0 %v1248_v40, %s1304_s28 }
 0xa80   :  { %491 = vperm.xlu0 %1220, %v1398_v9  }
 0xa84   :  { %1221 = vset.pattern.permute.xlu0 %v1310_v63 }
 0xaee   :  { %v487_v42 = vpop.permute.xlu0 %486 }
 0xaef   :  { %v489_v43 = vmul.f32 %v1246_v32, %v487_v42 }
 0xaf1   :  { %497 = vrot.lane.b32.xlu1 %v489_v43, %s1305_s3 }
 0xaff   :  { %v492_v45 = vpop.permute.xlu0 %491 }
 0xb00   :  { %v494_v46 = vmul.f32 %v1418_v11, %v492_v45 }
 0xb02   :  { %v495_v47 = vadd.f32 %v1424_v14, %v494_v46 }
 0xb63   :  { %v498_v44 = vpop.permute.xlu1 %497 }
 0xb64   :  { %1118 = vmatmul.mubr.msk.f32.vlgmr.msra.gmra.mrb[4].mxu0 %vm69_vm1, %v498_v44 }
 0xb65   :  { %1191 = vmatpush3.bf16.msra.mxu0 %v1390_v7  ;;  %1139 = vmatprep.mubr.msk.f32.mxu0 %vm1301_vm0, %v1302_v2 }
 0xb66   :  { %1192 = vmatprep.subr.bf16.mxu0 %v1300_v1 }
 0xb69   :  { %1194 = vmatpush3.bf16.msra.mxu0 %v1402_v10 }
 0xc37   :  { %v567_v48 = vpop.f32.mrb[4].mxu0 }
 0xc38   :  { %v571_v49 = vadd.f32 %v567_v48, %v495_v47  ;;  %v1119_v50 = vpop.f32.mrb[5].mxu0  ;;  %v1312_v47 = vmov 7  }
 0xc3a   :  { %v1010_v51 = vmul.f32 -1.442695, %v571_v49 }
 0xc3c   :  { %1249 = vpow2.f32 %v1010_v51 }
 0xc46   :  { %v1250_v52 = vpop.eup %1249 }
 0xc47   :  { %v575_v53 = vadd.f32 1.0, %v1250_v52 }
 0xc49   :  { %1251 = vrcp.f32 %v575_v53 }
 0xc53   :  { %v1252_v54 = vpop.eup %1251 }
 0xc54   :  { %v578_v55 = vmul.f32 2.0, %v1252_v54  ;;  %v580_v59 = vmul.f32 %v1252_v54, %v483_v39 }
 0xc56   :  { %v1011_v56 = vadd.f32 -1.0, %v578_v55 }
 0xc58   :  { %582 = vrot.lane.b32.xlu1 %v1011_v56, %s1304_s28 }
 0xcca   :  { %v583_v57 = vpop.permute.xlu1 %582 }
 0xccb   :  { %v585_v58 = vmul.f32 %v1252_v54, %v583_v57 }
 0xccd   :  { %587 = vrot.lane.b32.xlu1 %v585_v58, %s1305_s3 }
 0xd3f   :  { %v588_v60 = vpop.permute.xlu1 %587 }
 0xd40   :  { %v590_v61 = vadd.f32 %v588_v60, %v580_v59 }
 0xd42   :  { %1253 = vtanh.f32 %v590_v61 }
 0xd4c   :  { %v1254_v62 = vpop.eup %1253 }
 0xd4d   :  { %593 = vrot.lane.b32.xlu0 %v1254_v62, %s1304_s28 }
 0xd51   :  { %598 = vperm.xlu0 %1221, %v1398_v9  }
 0xd55   :  { %1222 = vset.pattern.permute.xlu0 %v1311_v25 }
 0xdbf   :  { %v594_v0 = vpop.permute.xlu0 %593 }
 0xdc0   :  { %v596_v4 = vmul.f32 %v1252_v54, %v594_v0 }
 0xdc2   :  { %604 = vrot.lane.b32.xlu1 %v596_v4, %s1305_s3 }
 0xdd0   :  { %v599_v6 = vpop.permute.xlu0 %598 }
 0xdd1   :  { %v601_v8 = vmul.f32 %v1418_v11, %v599_v6 }
 0xdd3   :  { %v602_v12 = vadd.f32 %v1424_v14, %v601_v8 }
 0xe34   :  { %v605_v5 = vpop.permute.xlu1 %604 }
 0xe35   :  { %1129 = vmatmul.mubr.msk.f32.vlgmr.msra.gmra.mrb[4].mxu1 %vm69_vm1, %v605_v5 }
 0xe36   :  { %1197 = vmatpush3.bf16.msra.mxu1 %v1390_v7  ;;  %1150 = vmatprep.mubr.msk.f32.mxu1 %vm1301_vm0, %v1302_v2 }
 0xe37   :  { %1198 = vmatprep.subr.bf16.mxu1 %v1300_v1 }
 0xe3a   :  { %1200 = vmatpush3.bf16.msra.mxu1 %v1402_v10 }
 0xf08   :  { %v674_v13 = vpop.f32.mrb[4].mxu1 }
 0xf09   :  { %v678_v15 = vadd.f32 %v674_v13, %v602_v12  ;;  %v1130_v16 = vpop.f32.mrb[5].mxu1  ;;  %v1021_v12 = vld [vmem:[%s1537_s4] ss:$0 sm:$0xff] }
 0xf0b   :  { %v1013_v17 = vmul.f32 -1.442695, %v678_v15 }
 0xf0d   :  { %1255 = vpow2.f32 %v1013_v17 }
 0xf17   :  { %v1256_v18 = vpop.eup %1255 }
 0xf18   :  { %v682_v19 = vadd.f32 1.0, %v1256_v18  ;;  %v1023_v18 = vld [vmem:[%s1539_s6] ss:$0 sm:$0xff] }
 0xf1a   :  { %1257 = vrcp.f32 %v682_v19 }
 0xf24   :  { %v1258_v7 = vpop.eup %1257 }
 0xf25   :  { %v685_v20 = vmul.f32 2.0, %v1258_v7  ;;  %v687_v21 = vmul.f32 %v1258_v7, %v590_v61 }
 0xf27   :  { %v1014_v2 = vadd.f32 -1.0, %v685_v20  ;;  %v1022_v20 = vld [vmem:[%s1538_s5] ss:$0 sm:$0xff] }
 0xf29   :  { %689 = vrot.lane.b32.xlu1 %v1014_v2, %s1304_s28 }
 0xf9b   :  { %v690_v1 = vpop.permute.xlu1 %689 }
 0xf9c   :  { %v692_v10 = vmul.f32 %v1258_v7, %v690_v1 }
 0xf9e   :  { %694 = vrot.lane.b32.xlu1 %v692_v10, %s1305_s3 }
0x1010   :  { %v695_v22 = vpop.permute.xlu1 %694 }
0x1011   :  { %v697_v23 = vadd.f32 %v695_v22, %v687_v21 }
0x1013   :  { %1259 = vtanh.f32 %v697_v23 }
0x101d   :  { %v1260_v24 = vpop.eup %1259 }
0x101e   :  { %700 = vrot.lane.b32.xlu0 %v1260_v24, %s1304_s28 }
0x1022   :  { %705 = vperm.xlu0 %1222, %v1398_v9  }
0x1026   :  { %1223 = vset.pattern.permute.xlu0 %v1312_v47 }
0x1090   :  { %v701_v26 = vpop.permute.xlu0 %700 }
0x1091   :  { %v703_v27 = vmul.f32 %v1258_v7, %v701_v26 }
0x1093   :  { %711 = vrot.lane.b32.xlu1 %v703_v27, %s1305_s3 }
0x10a1   :  { %v706_v29 = vpop.permute.xlu0 %705 }
0x10a2   :  { %v708_v30 = vmul.f32 %v1418_v11, %v706_v29 }
0x10a4   :  { %v709_v31 = vadd.f32 %v1424_v14, %v708_v30 }
0x1105   :  { %v712_v28 = vpop.permute.xlu1 %711 }
0x1106   :  { %1140 = vmatmul.mubr.msk.f32.vlgmr.msra.gmra.mrb[6].mxu0 %vm69_vm1, %v712_v28 }
0x11d9   :  { %v781_v32 = vpop.f32.mrb[6].mxu0 }
0x11da   :  { %v785_v33 = vadd.f32 %v781_v32, %v709_v31  ;;  %v1141_v34 = vpop.f32.mrb[7].mxu0  ;;  %v1024_v31 = vld [vmem:[#allocation2] ss:$0 sm:$0xff] }
0x11dc   :  { %v1016_v35 = vmul.f32 -1.442695, %v785_v33 }
0x11de   :  { %1261 = vpow2.f32 %v1016_v35 }
0x11e8   :  { %v1262_v36 = vpop.eup %1261 }
0x11e9   :  { %v789_v37 = vadd.f32 1.0, %v1262_v36 }
0x11eb   :  { %1263 = vrcp.f32 %v789_v37 }
0x11f5   :  { %v1264_v38 = vpop.eup %1263 }
0x11f6   :  { %v792_v39 = vmul.f32 2.0, %v1264_v38  ;;  %v794_v43 = vmul.f32 %v1264_v38, %v697_v23 }
0x11f8   :  { %v1017_v40 = vadd.f32 -1.0, %v792_v39 }
0x11fa   :  { %796 = vrot.lane.b32.xlu1 %v1017_v40, %s1304_s28 }
0x126c   :  { %v797_v41 = vpop.permute.xlu1 %796 }
0x126d   :  { %v799_v42 = vmul.f32 %v1264_v38, %v797_v41 }
0x126f   :  { %801 = vrot.lane.b32.xlu1 %v799_v42, %s1305_s3 }
0x12e1   :  { %v802_v44 = vpop.permute.xlu1 %801 }
0x12e2   :  { %v804_v45 = vadd.f32 %v802_v44, %v794_v43 }
0x12e4   :  { %1265 = vtanh.f32 %v804_v45 }
0x12ee   :  { %v1266_v46 = vpop.eup %1265 }
0x12ef   :  { %807 = vrot.lane.b32.xlu0 %v1266_v46, %s1304_s28 }
0x12f3   :  { %812 = vperm.xlu0 %1223, %v1398_v9  }
0x12f7   :  { %1224 = vset.pattern.permute.xlu0 %v1303_v3 }
0x1361   :  { %v808_v48 = vpop.permute.xlu0 %807 }
0x1362   :  { %v810_v49 = vmul.f32 %v1264_v38, %v808_v48 }
0x1364   :  { %818 = vrot.lane.b32.xlu1 %v810_v49, %s1305_s3 }
0x1372   :  { %v813_v51 = vpop.permute.xlu0 %812 }
0x1373   :  { %v815_v52 = vmul.f32 %v1418_v11, %v813_v51 }
0x1375   :  { %v816_v53 = vadd.f32 %v1424_v14, %v815_v52 }
0x13d6   :  { %v819_v50 = vpop.permute.xlu1 %818 }
0x13d7   :  { %1151 = vmatmul.mubr.msk.f32.vlgmr.msra.gmra.mrb[6].mxu1 %vm69_vm1, %v819_v50 }
0x14aa   :  { %v888_v54 = vpop.f32.mrb[6].mxu1 }
0x14ab   :  { %v892_v55 = vadd.f32 %v888_v54, %v816_v53  ;;  %v1152_v56 = vpop.f32.mrb[7].mxu1 }
0x14ad   :  { %v1019_v57 = vmul.f32 -1.442695, %v892_v55 }
0x14af   :  { %1267 = vpow2.f32 %v1019_v57 }
0x14b9   :  { %v1268_v9 = vpop.eup %1267 }
0x14ba   :  { %v896_v58 = vadd.f32 1.0, %v1268_v9 }
0x14bc   :  { %1269 = vrcp.f32 %v896_v58 }
0x14c6   :  { %v1270_v3 = vpop.eup %1269 }
0x14c7   :  { %v899_v59 = vmul.f32 2.0, %v1270_v3  ;;  %v901_v11 = vmul.f32 %v1270_v3, %v804_v45 }
0x14c9   :  { %v1020_v60 = vadd.f32 -1.0, %v899_v59 }
0x14cb   :  { %903 = vrot.lane.b32.xlu1 %v1020_v60, %s1304_s28 }
0x153d   :  { %v904_v61 = vpop.permute.xlu1 %903 }
0x153e   :  { %v906_v62 = vmul.f32 %v1270_v3, %v904_v61 }
0x1540   :  { %908 = vrot.lane.b32.xlu1 %v906_v62, %s1305_s3 }
0x15b2   :  { %v909_v63 = vpop.permute.xlu1 %908 }
0x15b3   :  { %v911_v14 = vadd.f32 %v909_v63, %v901_v11 }
0x15b5   :  { %1271 = vtanh.f32 %v911_v14 }
0x15bf   :  { %v1272_v0 = vpop.eup %1271 }
0x15c0   :  { %914 = vrot.lane.b32.xlu0 %v1272_v0, %s1304_s28 }
0x1632   :  { %v915_v4 = vpop.permute.xlu0 %914 }
0x1633   :  { %v917_v5 = vmul.f32 %v1270_v3, %v915_v4 }
0x1635   :  { %919 = vrot.lane.b32.xlu1 %v917_v5, %s1305_s3 }
0x16a7   :  { %v920_v6 = vpop.permute.xlu1 %919 }
0x16a8   :  { %v922_v8 = vsel %vm69_vm1, %v920_v6, 0.0 }
0x16a9   :  { %923 = vadd.xlane.f32.xlu0 %v922_v8 }
0x16bf   :  { %946 = vrot.lane.b32.xlu0 %v1021_v12, %s1313_s9 }
0x16c3   :  { %966 = vrot.lane.b32.xlu0 %v1023_v18, %s1313_s9 }
0x1736   :  { %v924_v13 = vpop.xlane.xlu0 %923 }
0x1737   :  { %v926_v15 = vmul.f32 0.03125, %v924_v13 }
0x1739   :  { %v927_v16 = vsub.f32 %v917_v5, %v926_v15 }
0x173a   :  { %v947_v21 = vpop.permute.xlu0 %946 }
0x173b   :  { %v928_v17 = vmul.f32 %v927_v16, %v927_v16 }
0x173d   :  { %930 = vrot.lane.b32.xlu1 %v928_v17, %s1305_s3 }
0x173e   :  { %v967_v26 = vpop.permute.xlu0 %966 }
0x17af   :  { %v931_v19 = vpop.permute.xlu1 %930 }
0x17b0   :  { %v933_v7 = vsel %vm69_vm1, %v931_v19, 0.0 }
0x17b1   :  { %934 = vadd.xlane.f32.xlu1 %v933_v7 }
0x17c2   :  { %956 = vrot.lane.b32.xlu1 %v1022_v20, %s1313_s9 }
0x183e   :  { %v935_v2 = vpop.xlane.xlu1 %934 }
0x183f   :  { %v936_v1 = vmul.f32 0.03125, %v935_v2 }
0x1841   :  { %v937_v10 = vadd.f32 1e-05, %v936_v1 }
0x1842   :  { %v957_v24 = vpop.permute.xlu1 %956 }
0x1843   :  { %1273 = vrsqrt.f32 %v937_v10 }
0x184d   :  { %v1274_v22 = vpop.eup %1273 }
0x184e   :  { %v939_v23 = vmul.f32 %v1274_v22, %v927_v16 }
0x1850   :  { %v949_v25 = vmul.f32 %v947_v21, %v939_v23 }
0x1852   :  { %v959_v27 = vadd.f32 %v957_v24, %v949_v25 }
0x1854   :  { %v969_v28 = vmul.f32 %v967_v26, %v959_v27 }
0x1856   :  { %971 = vrot.lane.b32.xlu0 %v969_v28, %s1305_s3 }
0x18c8   :  { %v972_v29 = vpop.permute.xlu0 %971 }
0x18c9   :  { %v974_v30 = vsel %vm69_vm1, %v972_v29, 0.0 }
0x18ca   :  { %975 = vadd.xlane.f32.xlu1 %v974_v30 }
0x1957   :  { %v976_v32 = vpop.xlane.xlu1 %975 }
0x1958   :  { %v984_v33 = vadd.f32 %v1024_v31, %v976_v32 }
0x195a   :  { %987 = vperm.xlu0 %1224, %v984_v33  }
0x19d9   :  { %v988_v34 = vpop.permute.xlu0 %987 }
0x19da   :  { %990 = vst [vmem:[%s1541_s8] sm:$0xff] %v988_v34 }
0x19db   :  { %995 = vsyncpa [#allocation4], 1 }

</bundles_post_ra>
